<compile_context>
chip_gen: v7x
topology: tpu7x:2x2x1
jax: 0.10.0
libtpu: 0.0.40
codegen_flags: <defaults>
</compile_context>

<pallas_src>
import functools

import jax
import jax.numpy as jnp
from jax import lax
from jax.experimental import pallas as pl
from jax.experimental.pallas import tpu as pltpu


# ---------------------------------------------------------------------------
# Generation-aware VMEM budgets
# ---------------------------------------------------------------------------

def _physical_vmem_bytes():
    try:
        info = pltpu.get_tpu_info()
        for attr in ("vmem_capacity_bytes", "vmem_size_bytes", "vmem_bytes"):
            v = int(getattr(info, attr, 0) or 0)
            if v > 0:
                return v
    except Exception:
        pass
    return 128 << 20  # conservative default (v5e / v6e)


_PHYS_VMEM = _physical_vmem_bytes()
_BIG_VMEM = _PHYS_VMEM >= (96 << 20)            # v5e / v6e (128 MiB) vs v7x (64 MiB)
_FUSED_VMEM_BUDGET = (100 << 20) if _BIG_VMEM else (44 << 20)
_VMEM_CLAMP = (112 << 20) if _BIG_VMEM else (48 << 20)
_ROW_TILE_CAP = 1024 if _BIG_VMEM else 512
_LANE_TILE_CAP = 4096


def _vmem_limit(need_bytes):
    """Explicit scoped-VMEM limit: need + headroom, clamped per chip generation."""
    return int(min(max(need_bytes + (8 << 20), 32 << 20), _VMEM_CLAMP))


def _pick_tile(total, unit, cap):
    """Pick a tile size for one dim.

    Returns (tile, tail_is_partial):
      * largest exact divisor of `total` that is a multiple of `unit` and <= cap
        (no partial tiles), else
      * the full extent when total <= cap (always a legal BlockSpec dim), else
      * `cap` rounded down to a multiple of `unit`, with a cdiv grid and a
        partial tail tile (tail_is_partial=True).
    """
    top = cap - (cap % unit)
    for cand in range(top, 0, -unit):
        if total % cand == 0:
            return cand, False
    if total <= cap:
        return total, False
    return top, True


# ---------------------------------------------------------------------------
# Kernels
# ---------------------------------------------------------------------------

def _cca_fused_kernel(x_ref, g_ref, w_ref, o_ref, *, k, cx, cg, inv_hwx, inv_hwg):
    """Fused single-pass CCA for one group of k packed batches.

    x_ref: (k*cx, HWx)   g_ref: (k*cg, HWg)
    w_ref: (cx, cx+cg+1) = [wx/2 | wg/2 | (bx+bg)/2]  (float32, shared)
    o_ref: (k*cx, HWx)
    """
    w = w_ref[...]                                            # small, resident
    one = jnp.ones((1, 1), dtype=jnp.float32)

    # Per-batch pooling + attention (k is small and static -> unrolled).
    # Widening (f32) lane reductions directly on the ref; no full-slab upcast.
    scales = []
    for b in range(k):
        px = jnp.sum(x_ref[b * cx:(b + 1) * cx, :], axis=1, keepdims=True,
                     dtype=jnp.float32) * inv_hwx             # (cx, 1)
        pg = jnp.sum(g_ref[b * cg:(b + 1) * cg, :], axis=1, keepdims=True,
                     dtype=jnp.float32) * inv_hwg             # (cg, 1)
        pooled = jnp.concatenate([px, pg, one], axis=0)       # (cx+cg+1, 1)
        att = jnp.dot(w, pooled, preferred_element_type=jnp.float32)  # (cx, 1)
        scales.append(jax.nn.sigmoid(att))
    scale = scales[0] if k == 1 else jnp.concatenate(scales, axis=0)   # (k*cx, 1)

    # scale + ReLU in the input's native dtype (scale cast down, not x up).
    x = x_ref[...]
    o_ref[...] = jnp.maximum(x * scale.astype(x.dtype), 0).astype(o_ref.dtype)


def _row_sum_kernel(x_ref, o_ref, *, lt, total_l, tiles_per_split, mask_tail):
    """Accumulate per-row sums (f32) across spatial tiles.

    Grid = (split, row_tiles, lane_tiles_per_split); last axis is the
    reduction ("arbitrary"), first two are "parallel".
    o_ref block: (1, rt, 1) at block index (split, row_tile, 0).
    """
    j = pl.program_id(2)

    @pl.when(j == 0)
    def _():
        o_ref[...] = jnp.zeros_like(o_ref)

    x = x_ref[...]
    if mask_tail:
        s = pl.program_id(0)
        start = (s * tiles_per_split + j) * lt
        lane = lax.broadcasted_iota(jnp.int32, x.shape, 1)
        x = jnp.where(lane < (total_l - start), x, jnp.zeros_like(x))
    o_ref[...] += jnp.sum(x, axis=1, keepdims=True, dtype=jnp.float32)


def _scale_relu_kernel(x_ref, s_ref, o_ref):
    """Elementwise per-row scale + ReLU, computed in the input's native dtype."""
    x = x_ref[...]
    s = s_ref[...].astype(x.dtype)
    o_ref[...] = jnp.maximum(x * s, 0).astype(o_ref.dtype)


# ---------------------------------------------------------------------------
# Wrappers
# ---------------------------------------------------------------------------

def _row_sums(x2):
    """Tiled per-row sum of a (R, L) slab -> (R, 1) float32."""
    R, L = x2.shape
    rt, _ = _pick_tile(R, 8, _ROW_TILE_CAP)
    lt, mask_tail = _pick_tile(L, 128, _LANE_TILE_CAP)
    r_tiles = pl.cdiv(R, rt)
    t_total = pl.cdiv(L, lt)
    # Split the reduction across a leading "parallel" axis when there is only
    # one row tile (keeps both v7x TensorCores busy; harmless elsewhere).
    n_split = 2 if (r_tiles == 1 and t_total >= 2 and t_total % 2 == 0) else 1
    t_ps = t_total // n_split

    need = 2 * rt * lt * x2.dtype.itemsize + rt * lt * 4 + 4 * rt * 4

    kernel = functools.partial(_row_sum_kernel, lt=lt, total_l=L,
                               tiles_per_split=t_ps, mask_tail=mask_tail)
    partial = pl.pallas_call(
        kernel,
        out_shape=jax.ShapeDtypeStruct((n_split, R, 1), jnp.float32),
        grid=(n_split, r_tiles, t_ps),
        in_specs=[pl.BlockSpec((rt, lt), lambda s, i, j: (i, s * t_ps + j))],
        out_specs=pl.BlockSpec((1, rt, 1), lambda s, i, j: (s, i, 0)),
        compiler_params=pltpu.CompilerParams(
            dimension_semantics=("parallel", "parallel", "arbitrary"),
            vmem_limit_bytes=_vmem_limit(need),
        ),
    )(x2)
    return jnp.sum(partial, axis=0)                           # (R, 1) float32


def _scale_relu(x2, scale_col):
    """Tiled x * scale(row) -> ReLU.  Both grid axes parallel."""
    R, L = x2.shape
    rt, _ = _pick_tile(R, 8, _ROW_TILE_CAP)
    lt, _ = _pick_tile(L, 128, _LANE_TILE_CAP)
    need = 2 * (2 * rt * lt * x2.dtype.itemsize) + 4 * rt * 4
    return pl.pallas_call(
        _scale_relu_kernel,
        out_shape=jax.ShapeDtypeStruct((R, L), x2.dtype),
        grid=(pl.cdiv(R, rt), pl.cdiv(L, lt)),
        in_specs=[
            pl.BlockSpec((rt, lt), lambda i, j: (i, j)),
            pl.BlockSpec((rt, 1), lambda i, j: (i, 0)),
        ],
        out_specs=pl.BlockSpec((rt, lt), lambda i, j: (i, j)),
        compiler_params=pltpu.CompilerParams(
            dimension_semantics=("parallel", "parallel"),
            vmem_limit_bytes=_vmem_limit(need),
        ),
    )(x2, scale_col)


def cca_forward(g, x, wx, bx, wg, bg, *, mode="auto"):
    """CCA forward.  g: (B, F_g, Hg, Wg), x: (B, F_x, H, W), NCHW.

    mode: "auto" (pick by VMEM footprint / chip), "fused", or "two_phase".
    HBM I/O stays in the activations' native dtype (bf16 in -> bf16 streamed);
    pooling sums, the attention dot and the sigmoid are always f32.
    """
    B, Cx, H, W = x.shape
    Bg, Cg, Hg, Wg = g.shape
    assert B == Bg
    hw_x, hw_g = H * W, Hg * Wg

    x2 = x.reshape(B * Cx, hw_x)
    g2 = g.reshape(B * Cg, hw_g)

    # batch-packing factor for the fused path: smallest k | B such that both
    # row-block dims are sublane-aligned (multiple of 8); else full batch
    # (full-extent blocks are always legal).
    k = B
    for cand in range(1, B + 1):
        if B % cand == 0 and (cand * Cx) % 8 == 0 and (cand * Cg) % 8 == 0:
            k = cand
            break

    blk_x = k * Cx * hw_x * x.dtype.itemsize
    blk_g = k * Cg * hw_g * g.dtype.itemsize
    w_bytes = Cx * (Cx + Cg + 1) * 4
    # 2x double-buffering on streamed blocks, weight resident, + one block of
    # slack for elementwise temporaries (native dtype, no f32 slabs anymore).
    fused_need = 2 * (2 * blk_x + blk_g) + 2 * w_bytes + blk_x + (2 << 20)

    if mode == "fused":
        # Even when forced, never exceed physical VMEM on this chip.
        use_fused = fused_need <= (_PHYS_VMEM - (12 << 20))
    elif mode == "two_phase":
        use_fused = False
    else:  # auto
        use_fused = fused_need <= _FUSED_VMEM_BUDGET
        if use_fused and not _BIG_VMEM and (B // k) == 1 and fused_need > (8 << 20):
            # v7x: a 1-step fused grid drives only one of the two TensorCores;
            # the fully-parallel two-phase path usually wins for big slabs.
            use_fused = False

    if use_fused:
        # Shared small weight with the bias folded as an extra column:
        #   att = [0.5*wx | 0.5*wg | 0.5*(bx+bg)] @ [px; pg; 1]
        w_aug = jnp.concatenate(
            [0.5 * wx.astype(jnp.float32),
             0.5 * wg.astype(jnp.float32),
             (0.5 * (bx + bg)).astype(jnp.float32)[:, None]],
            axis=1)                                            # (Cx, Cx+Cg+1)

        kernel = functools.partial(
            _cca_fused_kernel, k=k, cx=Cx, cg=Cg,
            inv_hwx=1.0 / hw_x, inv_hwg=1.0 / hw_g)

        out2 = pl.pallas_call(
            kernel,
            out_shape=jax.ShapeDtypeStruct((B * Cx, hw_x), x.dtype),
            grid=(B // k,),
            in_specs=[
                pl.BlockSpec((k * Cx, hw_x), lambda i: (i, 0)),
                pl.BlockSpec((k * Cg, hw_g), lambda i: (i, 0)),
                pl.BlockSpec((Cx, Cx + Cg + 1), lambda i: (0, 0)),
            ],
            out_specs=pl.BlockSpec((k * Cx, hw_x), lambda i: (i, 0)),
            compiler_params=pltpu.CompilerParams(
                dimension_semantics=("parallel",),
                vmem_limit_bytes=_vmem_limit(fused_need),
            ),
        )(x2, g2, w_aug)
        return out2.reshape(B, Cx, H, W)

    # ---- two-phase fallback (large H*W / tight VMEM) -------------------------
    # Phase 1: pooled means via tiled Pallas row-sums; the tiny attention math
    # (B x (Cx+Cg) @ (Cx+Cg) x Cx + sigmoid) stays in plain JAX.
    px = _row_sums(x2).reshape(B, Cx) * (1.0 / hw_x)
    pg = _row_sums(g2).reshape(B, Cg) * (1.0 / hw_g)
    w_half = 0.5 * jnp.concatenate([wx, wg], axis=1).astype(jnp.float32)   # (Cx, Cx+Cg)
    b_half = 0.5 * (bx + bg).astype(jnp.float32)                           # (Cx,)
    att = jnp.concatenate([px, pg], axis=1) @ w_half.T + b_half            # (B, Cx)
    scale = jax.nn.sigmoid(att).reshape(B * Cx, 1).astype(jnp.float32)

    # Phase 2: streaming scale + ReLU, tiled over (rows, spatial), all parallel.
    out2 = _scale_relu(x2, scale)
    return out2.reshape(B, Cx, H, W)


def cca_reference(g, x, wx, bx, wg, bg):
    """Pure-JAX reference mirroring the PyTorch forward."""
    px = x.mean(axis=(2, 3))                 # (B, F_x)
    pg = g.mean(axis=(2, 3))                 # (B, F_g)
    att_x = px @ wx.T + bx                   # (B, F_x)
    att_g = pg @ wg.T + bg                   # (B, F_x)
    scale = jax.nn.sigmoid((att_x + att_g) / 2.0)[:, :, None, None]
    return jnp.maximum(x * scale, 0.0)


if __name__ == "__main__":
    key = jax.random.PRNGKey(0)
    k_g, k_x, k_wx, k_bx, k_wg, k_bg = jax.random.split(key, 6)

    B, F_g, F_x, H, W = 2, 6, 4, 16, 16
    g = jax.random.normal(k_g, (B, F_g, H, W), dtype=jnp.float32)
    x = jax.random.normal(k_x, (B, F_x, H, W), dtype=jnp.float32)

    # nn.Linear(F_x, F_x): weight (F_x, F_x), bias (F_x,)
    wx = jax.random.normal(k_wx, (F_x, F_x), dtype=jnp.float32) * 0.2
    bx = jax.random.normal(k_bx, (F_x,), dtype=jnp.float32) * 0.1
    # nn.Linear(F_g, F_x): weight (F_x, F_g), bias (F_x,)
    wg = jax.random.normal(k_wg, (F_x, F_g), dtype=jnp.float32) * 0.2
    bg = jax.random.normal(k_bg, (F_x,), dtype=jnp.float32) * 0.1

    ref = cca_reference(g, x, wx, bx, wg, bg)

    # fused single-pass path
    out_fused = jax.block_until_ready(cca_forward(g, x, wx, bx, wg, bg, mode="fused"))
    assert out_fused.shape == ref.shape == (B, F_x, H, W)
    assert jnp.allclose(out_fused, ref, atol=1e-5, rtol=1e-5), (
        f"fused mismatch: max abs err = {jnp.max(jnp.abs(out_fused - ref))}")

    # two-phase tiled path (used for large H*W / tight VMEM), exercised here too
    out_tiled = jax.block_until_ready(cca_forward(g, x, wx, bx, wg, bg, mode="two_phase"))
    assert jnp.allclose(out_tiled, ref, atol=1e-5, rtol=1e-5), (
        f"two-phase mismatch: max abs err = {jnp.max(jnp.abs(out_tiled - ref))}")

    # default auto path (picks fused at these sizes on every generation)
    out_auto = jax.block_until_ready(cca_forward(g, x, wx, bx, wg, bg, mode="auto"))
    assert jnp.allclose(out_auto, ref, atol=1e-5, rtol=1e-5), (
        f"auto mismatch: max abs err = {jnp.max(jnp.abs(out_auto - ref))}")

    print("KERNEL_OK")
</pallas_src>

<mosaic_0001>
module attributes {stable_mosaic.version = 11 : i64} {
  func.func @_cca_fused_kernel(%arg0: i32, %arg1: memref<8x256xf32, #tpu.memory_space<vmem>>, %arg2: memref<12x256xf32, #tpu.memory_space<vmem>>, %arg3: memref<4x11xf32, #tpu.memory_space<vmem>>, %arg4: memref<8x256xf32, #tpu.memory_space<vmem>>) attributes {dimension_semantics = [#tpu.dimension_semantics<parallel>], iteration_bounds = array<i64: 1>, scalar_prefetch = 0 : i64, scratch_operands = 0 : i64, tpu.core_type = #tpu.core_type<tc>, window_params = [{transform_indices = @transform_0, window_bounds = array<i64: 8, 256>}, {transform_indices = @transform_1, window_bounds = array<i64: 12, 256>}, {pipeline_mode = #tpu.pipeline_mode<synchronous>, transform_indices = @transform_2, window_bounds = array<i64: 4, 11>}, {transform_indices = @transform_3, window_bounds = array<i64: 8, 256>}]} {
    %c0 = arith.constant 0 : index
    %c0_0 = arith.constant 0 : index
    %0 = vector.load %arg3[%c0, %c0_0] : memref<4x11xf32, #tpu.memory_space<vmem>>, vector<4x11xf32>
    %cst = arith.constant 1.000000e+00 : f32
    %1 = vector.broadcast %cst : f32 to vector<1x1xf32>
    %c0_1 = arith.constant 0 : index
    %c0_2 = arith.constant 0 : index
    %2 = vector.load %arg1[%c0_1, %c0_2] : memref<8x256xf32, #tpu.memory_space<vmem>>, vector<4x256xf32>
    %cst_3 = arith.constant dense<0.000000e+00> : vector<4xf32>
    %3 = vector.multi_reduction <add>, %2, %cst_3 [1] : vector<4x256xf32> to vector<4xf32>
    %4 = vector.shape_cast %3 : vector<4xf32> to vector<4x1xf32>
    %cst_4 = arith.constant 3.906250e-03 : f32
    %5 = vector.broadcast %cst_4 : f32 to vector<4x1xf32>
    %6 = arith.mulf %4, %5 : vector<4x1xf32>
    %c0_5 = arith.constant 0 : index
    %c0_6 = arith.constant 0 : index
    %7 = vector.load %arg2[%c0_5, %c0_6] : memref<12x256xf32, #tpu.memory_space<vmem>>, vector<6x256xf32>
    %cst_7 = arith.constant dense<0.000000e+00> : vector<6xf32>
    %8 = vector.multi_reduction <add>, %7, %cst_7 [1] : vector<6x256xf32> to vector<6xf32>
    %9 = vector.shape_cast %8 : vector<6xf32> to vector<6x1xf32>
    %cst_8 = arith.constant 3.906250e-03 : f32
    %10 = vector.broadcast %cst_8 : f32 to vector<6x1xf32>
    %11 = arith.mulf %9, %10 : vector<6x1xf32>
    %12 = tpu.concatenate %6, %11, %1 in 0 : vector<4x1xf32>, vector<6x1xf32>, vector<1x1xf32> -> vector<11x1xf32>
    %cst_9 = arith.constant dense<0.000000e+00> : vector<4x1xf32>
    %13 = tpu.matmul %0, %12, %cst_9 {dimension_numbers = #tpu.dot_dimension_numbers<[1], [0], [0], [1], [0, 0, 1, 1], [], []>} : vector<4x11xf32>, vector<11x1xf32>, vector<4x1xf32> -> vector<4x1xf32>
    %14 = arith.negf %13 : vector<4x1xf32>
    %15 = math.exp %14 : vector<4x1xf32>
    %cst_10 = arith.constant 1.000000e+00 : f32
    %16 = vector.broadcast %cst_10 : f32 to vector<4x1xf32>
    %17 = arith.addf %16, %15 : vector<4x1xf32>
    %18 = arith.divf %16, %17 : vector<4x1xf32>
    %c4 = arith.constant 4 : index
    %c0_11 = arith.constant 0 : index
    %19 = vector.load %arg1[%c4, %c0_11] : memref<8x256xf32, #tpu.memory_space<vmem>>, vector<4x256xf32>
    %cst_12 = arith.constant dense<0.000000e+00> : vector<4xf32>
    %20 = vector.multi_reduction <add>, %19, %cst_12 [1] : vector<4x256xf32> to vector<4xf32>
    %21 = vector.shape_cast %20 : vector<4xf32> to vector<4x1xf32>
    %cst_13 = arith.constant 3.906250e-03 : f32
    %22 = vector.broadcast %cst_13 : f32 to vector<4x1xf32>
    %23 = arith.mulf %21, %22 : vector<4x1xf32>
    %c6 = arith.constant 6 : index
    %c0_14 = arith.constant 0 : index
    %24 = vector.load %arg2[%c6, %c0_14] : memref<12x256xf32, #tpu.memory_space<vmem>>, vector<6x256xf32>
    %cst_15 = arith.constant dense<0.000000e+00> : vector<6xf32>
    %25 = vector.multi_reduction <add>, %24, %cst_15 [1] : vector<6x256xf32> to vector<6xf32>
    %26 = vector.shape_cast %25 : vector<6xf32> to vector<6x1xf32>
    %cst_16 = arith.constant 3.906250e-03 : f32
    %27 = vector.broadcast %cst_16 : f32 to vector<6x1xf32>
    %28 = arith.mulf %26, %27 : vector<6x1xf32>
    %29 = tpu.concatenate %23, %28, %1 in 0 : vector<4x1xf32>, vector<6x1xf32>, vector<1x1xf32> -> vector<11x1xf32>
    %cst_17 = arith.constant dense<0.000000e+00> : vector<4x1xf32>
    %30 = tpu.matmul %0, %29, %cst_17 {dimension_numbers = #tpu.dot_dimension_numbers<[1], [0], [0], [1], [0, 0, 1, 1], [], []>} : vector<4x11xf32>, vector<11x1xf32>, vector<4x1xf32> -> vector<4x1xf32>
    %31 = arith.negf %30 : vector<4x1xf32>
    %32 = math.exp %31 : vector<4x1xf32>
    %cst_18 = arith.constant 1.000000e+00 : f32
    %33 = vector.broadcast %cst_18 : f32 to vector<4x1xf32>
    %34 = arith.addf %33, %32 : vector<4x1xf32>
    %35 = arith.divf %33, %34 : vector<4x1xf32>
    %36 = tpu.concatenate %18, %35 in 0 : vector<4x1xf32>, vector<4x1xf32> -> vector<8x1xf32>
    %c0_19 = arith.constant 0 : index
    %c0_20 = arith.constant 0 : index
    %37 = vector.load %arg1[%c0_19, %c0_20] : memref<8x256xf32, #tpu.memory_space<vmem>>, vector<8x256xf32>
    %38 = vector.broadcast %36 : vector<8x1xf32> to vector<8x256xf32>
    %39 = arith.mulf %37, %38 : vector<8x256xf32>
    %cst_21 = arith.constant 0.000000e+00 : f32
    %40 = vector.broadcast %cst_21 : f32 to vector<8x256xf32>
    %41 = arith.maximumf %39, %40 : vector<8x256xf32>
    %c0_22 = arith.constant 0 : index
    %c0_23 = arith.constant 0 : index
    %42 = vector.load %arg4[%c0_22, %c0_23] : memref<8x256xf32, #tpu.memory_space<vmem>>, vector<8x256xf32>
    tpu.vector_store %arg4[%c0_22, %c0_23], %41 {strides = array<i32>} : memref<8x256xf32, #tpu.memory_space<vmem>>, vector<8x256xf32>,
    return
  }
  func.func @transform_0(%arg0: i32) -> (i32, i32) {
    %c0_i32 = arith.constant 0 : i32
    %c0_i32_0 = arith.constant 0 : i32
    return %arg0, %c0_i32 : i32, i32
  }
  func.func @transform_1(%arg0: i32) -> (i32, i32) {
    %c0_i32 = arith.constant 0 : i32
    %c0_i32_0 = arith.constant 0 : i32
    return %arg0, %c0_i32 : i32, i32
  }
  func.func @transform_2(%arg0: i32) -> (i32, i32) {
    %c0_i32 = arith.constant 0 : i32
    %c0_i32_0 = arith.constant 0 : i32
    %c0_i32_1 = arith.constant 0 : i32
    return %c0_i32, %c0_i32_0 : i32, i32
  }
  func.func @transform_3(%arg0: i32) -> (i32, i32) {
    %c0_i32 = arith.constant 0 : i32
    %c0_i32_0 = arith.constant 0 : i32
    return %arg0, %c0_i32 : i32, i32
  }
}

</mosaic_0001>

<bundles_post_ra>
// kernel: tpu_custom_call.1
= control target key start
LH: loop header
LB: loop body
LE: loop exit
PB: predicated region body
PF: predicated region fallthrough
CT: control target
= control target key end

     0   :  { %8 = vsyncpa [#allocation3], 0  ;;  %s512_s0 = inlined_call_operand.hbm [shape: f32[8,256], index: 0, kind: input, shape index: {}]   ;;  %s513_s1 = inlined_call_operand.hbm [shape: f32[12,256], index: 1, kind: input, shape index: {}]   ;;  %s514_s2 = inlined_call_operand.vmem [shape: f32[4,11], index: 2, kind: input, shape index: {}]   ;;  %s515_s3 = inlined_call_operand.hbm [shape: f32[8,256], index: 3, kind: output, shape index: {}]  }
   0x1   :  { %9 = vsyncpa [#allocation6], 0 }
   0x2   :  { %10 = vsyncpa [#allocation4], 0  ;;  %s426_s12 = smov [#allocation2]   ;;  %s427_s14 = smov [#allocation5]  }
   0x3   :  { %s17_s13 = sshll.u32 %s426_s12, 4  ;;  %s26_s15 = sshll.u32 %s427_s14, 4  ;;  %s18_s13 = int_to_ptr.vmem [resolvable:$true] %s17_s13  ;;  %s456_s15 = int_to_ptr.vmem [resolvable:$true] %s26_s15 }
   0x4   :  { %s354_s18 = scalar_lea.hbm %s512_s0, 256 }
   0x5   :  { %p355_p0 = scmp.ne.s32.totalorder %s512_s0, %s354_s18  ;;  %p358_p1 = scmp.lt.u32.totalorder %s354_s18, %s512_s0 }
   0x7   :  { %p360_p2 = pnand %p358_p1, %p355_p0 }
   0x9   :  { %363 = shalt.err (!%p360_p2)
}
   0xa   :  { %s364_s23 = scalar_lea.vmem %s18_s13, 256  ;;  %p369_p4 = scmp.lt.s32.totalorder %s18_s13, %s18_s13 }
   0xb   :  { %p365_p3 = scmp.ne.s32.totalorder %s18_s13, %s364_s23  ;;  %p370_p5 = scmp.lt.s32.totalorder %s364_s23, %s364_s23 }
   0xd   :  { %p371_p6 = por %p370_p5, %p369_p4 }
   0xf   :  { %p372_p7 = pnand %p371_p6, %p365_p3 }
  0x11   :  { %375 = shalt.err (!%p372_p7)
}
  0x12   :  { %20 = dma.hbm_to_vmem [thread:$0]  %s512_s0, 256, %s18_s13, [#allocation3]  }
  0x13   :  { %s376_s28 = scalar_lea.hbm %s513_s1, 512 }
  0x14   :  { %p377_p8 = scmp.ne.s32.totalorder %s513_s1, %s376_s28  ;;  %p380_p9 = scmp.lt.u32.totalorder %s376_s28, %s513_s1 }
  0x16   :  { %p382_p10 = pnand %p380_p9, %p377_p8 }
  0x18   :  { %385 = shalt.err (!%p382_p10)
}
  0x19   :  { %s386_s6 = scalar_lea.vmem %s456_s15, 512  ;;  %p391_p12 = scmp.lt.s32.totalorder %s456_s15, %s456_s15 }
  0x1a   :  { %p387_p11 = scmp.ne.s32.totalorder %s456_s15, %s386_s6  ;;  %p392_p13 = scmp.lt.s32.totalorder %s386_s6, %s386_s6 }
  0x1c   :  { %p393_p0 = por %p392_p13, %p391_p12 }
  0x1e   :  { %p394_p1 = pnand %p393_p0, %p387_p11 }
  0x20   :  { %397 = shalt.err (!%p394_p1)
}
  0x21   :  { %s428_s0 = smov 256   ;;  %s429_s7 = smov 16  }
  0x22   :  { %32 = dma.hbm_to_vmem [thread:$0]  %s513_s1, 512, %s456_s15, [#allocation6], %s428_s0, %s428_s0, %s429_s7  }
  0x23   :  { %420 = dma.done.wait [#allocation3], 256  }
  0x24   :  { %421 = vsyncadd [#allocation3], 4294967040 }
  0x25   :  { %422 = dma.done.wait [#allocation6], 512  }
  0x26   :  { %423 = vsyncadd [#allocation6], 4294966784  ;;  %vm163_vm0 = vcmask 1047558   ;;  %vm152_vm1 = vcmask 1047556   ;;  %vm44_vm2 = vcmask 1043456   ;;  %vm53_vm3 = vcmask 1045504  }
  0x27   :  { %v159_v0 = vld [vmem:[#allocation5] sm:$0xc0]  ;;  %v160_v1 = vld [vmem:[#allocation5 + $0x8] sm:$0xc0]  ;;  %v150_v2 = vld [vmem:[#allocation2] sm:$0xf0] }
  0x28   :  { %v164_v3 = vsel %vm163_vm0, %v159_v0, 0.0  ;;  %v165_v4 = vsel %vm163_vm0, %v160_v1, 0.0  ;;  %v151_v5 = vld [vmem:[#allocation2 + $0x8] sm:$0xf0]  ;;  %v153_v6 = vsel %vm152_vm1, %v150_v2, 0.0  ;;  %v430_v25 = vmov 0.0|0.0  }
  0x29   :  { %v166_v7 = vadd.f32 %v165_v4, %v164_v3  ;;  %v154_v8 = vsel %vm152_vm1, %v151_v5, 0.0  ;;  %v161_v9 = vld [vmem:[#allocation5 + $0x10] sm:$0xf]  ;;  %v162_v10 = vld [vmem:[#allocation5 + $0x18] sm:$0xf]  ;;  %330 = vmatprep.subr.bf16.mxu1 %v430_v25  ;;  %326 = vmatprep.subr.bf16.mxu0 %v430_v25  ;;  %vm431_vm4 = vmmov 0  }
  0x2a   :  { %v155_v11 = vadd.f32 %v154_v8, %v153_v6  ;;  %v169_v12 = vsel %vm44_vm2, %v161_v9, 0.0  ;;  %v170_v13 = vsel %vm44_vm2, %v162_v10, 0.0  ;;  %v51_v14 = vld [vmem:[#allocation5] sm:$0x3f]  ;;  %v52_v15 = vld [vmem:[#allocation5 + $0x8] sm:$0x3f] }
  0x2b   :  { %167 = vadd.xlane.f32.xlu0 %v166_v7  ;;  %v171_v16 = vadd.f32 %v170_v13, %v169_v12  ;;  %v54_v17 = vsel %vm53_vm3, %v51_v14, 0.0  ;;  %v55_v18 = vsel %vm53_vm3, %v52_v15, 0.0  ;;  %v42_v19 = vld [vmem:[#allocation2] sm:$0xf]  ;;  %v43_v20 = vld [vmem:[#allocation2 + $0x8] sm:$0xf] }
  0x2c   :  { %156 = vadd.xlane.f32.xlu1 %v155_v11  ;;  %v56_v21 = vadd.f32 %v55_v18, %v54_v17  ;;  %v45_v22 = vsel %vm44_vm2, %v42_v19, 0.0  ;;  %v46_v23 = vsel %vm44_vm2, %v43_v20, 0.0  ;;  %v432_v26 = vmov 0.0   ;;  %v41_v48 = vld [vmem:[%s514_s2] sm:$0xf]  ;;  %v272_v1 = vld [vmem:[#allocation2 + $0x8] sm:$0xff] }
  0x2d   :  { %v47_v24 = vadd.f32 %v46_v23, %v45_v22  ;;  %323 = vmatprep.mubr.msk.f32.mxu1 %vm431_vm4, %v432_v26  ;;  %316 = vmatprep.mubr.msk.f32.mxu0 %vm431_vm4, %v432_v26  ;;  %vm64_vm5 = vcmask 1041408   ;;  %vm70_vm6 = vcmask 1042432   ;;  %vm433_vm7 = vmmov 1   ;;  %v271_v0 = vld [vmem:[#allocation2] sm:$0xff]  ;;  %s435_s2 = smov [#allocation7]  }
  0x2e   :  { %vm328_vm8 = vmpackc.low %vm70_vm6, %vm433_vm7  ;;  %vm66_vm9 = vcmask 89088   ;;  %v434_v49 = vmov 0   ;;  %s290_s11 = sshll.u32 %s435_s2, 4  ;;  %s291_s11 = int_to_ptr.vmem [resolvable:$true] %s290_s11 }
  0x2f   :  { %172 = vadd.xlane.f32.xlu0 %v171_v16  ;;  %344 = vset.pattern.permute.xlu1 %v434_v49  ;;  %s398_s12 = scalar_lea.vmem %s291_s11, 256  ;;  %p403_p3 = scmp.lt.s32.totalorder %s291_s11, %s291_s11 }
  0x30   :  { %57 = vadd.xlane.f32.xlu1 %v56_v21  ;;  %345 = vset.pattern.permute.xlu0 %v434_v49  ;;  %p399_p2 = scmp.ne.s32.totalorder %s291_s11, %s398_s12  ;;  %p404_p4 = scmp.lt.s32.totalorder %s398_s12, %s398_s12 }
  0x32   :  { %p405_p5 = por %p404_p4, %p403_p3 }
  0x33   :  { %48 = vadd.xlane.f32.xlu0 %v47_v24 }
  0x34   :  { %p406_p6 = pnand %p405_p5, %p399_p2 }
  0xb8   :  { %v168_v27 = vpop.xlane.xlu0 %167 }
  0xb9   :  { %v157_v28 = vpop.xlane.xlu1 %156  ;;  %v174_v29 = vmul.f32 0.00390625, %v168_v27 }
  0xba   :  { %v158_v30 = vmul.f32 0.00390625, %v157_v28 }
  0xbb   :  { %v181_v35 = vrot.slane %v174_v29, 2 }
  0xbc   :  { %v173_v31 = vpop.xlane.xlu0 %172  ;;  %v177_v37 = vrot.slane %v158_v30, 4 }
  0xbd   :  { %v175_v32 = vmul.f32 0.00390625, %v173_v31  ;;  %v58_v33 = vpop.xlane.xlu1 %57 }
  0xbe   :  { %v59_v34 = vmul.f32 0.00390625, %v58_v33 }
  0xbf   :  { %v182_v36 = vrot.slane %v175_v32, 2 }
  0xc0   :  { %v61_v38 = vrot.slane %v59_v34, 4  ;;  %v49_v39 = vpop.xlane.xlu0 %48 }
  0xc1   :  { %v183_v40 = vsel %vm53_vm3, %v181_v35, %v182_v36  ;;  %v187_v41 = vsel %vm64_vm5, %v182_v36, 1.0  ;;  %v50_v42 = vmul.f32 0.00390625, %v49_v39 }
  0xc2   :  { %v65_v43 = vsel %vm64_vm5, %v61_v38, 1.0  ;;  %v186_v44 = vsel %vm44_vm2, %v177_v37, %v183_v40 }
  0xc3   :  { %v63_v45 = vsel %vm44_vm2, %v50_v42, %v61_v38  ;;  %v331_v46 = vpack.c.bf16 %v187_v41, %v186_v44 }
  0xc4   :  { %v327_v47 = vpack.c.bf16 %v65_v43, %v63_v45 }
  0xc5   :  { %333 = vmatpush3.bf16.msk.msra.mxu1 %vm328_vm8, %v331_v46 }
  0xc6   :  { %329 = vmatpush3.bf16.msk.msra.mxu0 %vm328_vm8, %v327_v47 }
  0xc8   :  { %324 = vmatmul.mubr.msk.f32.vlgmr.msra.gmra.mrb[0].mxu1 %vm66_vm9, %v41_v48 }
  0xc9   :  { %317 = vmatmul.mubr.msk.f32.vlgmr.msra.gmra.mrb[0].mxu0 %vm66_vm9, %v41_v48 }
 0x19b   :  { %v257_v50 = vpop.f32.mrb[0].mxu1 }
 0x19c   :  { %v305_v51 = vmul.f32 -1.442695, %v257_v50  ;;  %v140_v52 = vpop.f32.mrb[0].mxu0  ;;  %v325_v53 = vpop.f32.mrb[1].mxu1 }
 0x19d   :  { %v302_v54 = vmul.f32 -1.442695, %v140_v52  ;;  %v318_v55 = vpop.f32.mrb[1].mxu0 }
 0x19e   :  { %346 = vpow2.f32 %v305_v51 }
 0x19f   :  { %348 = vpow2.f32 %v302_v54 }
 0x1a8   :  { %v347_v56 = vpop.eup %346 }
 0x1a9   :  { %v349_v57 = vpop.eup %348  ;;  %v264_v58 = vadd.f32 1.0, %v347_v56 }
 0x1aa   :  { %v147_v59 = vadd.f32 1.0, %v349_v57 }
 0x1ab   :  { %350 = vrcp.f32 %v264_v58 }
 0x1ac   :  { %352 = vrcp.f32 %v147_v59 }
 0x1b5   :  { %v351_v60 = vpop.eup %350 }
 0x1b6   :  { %v353_v61 = vpop.eup %352  ;;  %v268_v62 = vrot.slane %v351_v60, 4 }
 0x1b8   :  { %v270_v63 = vsel %vm44_vm2, %v353_v61, %v268_v62 }
 0x1b9   :  { %275 = vperm.xlu1 %344, %v270_v63  }
 0x238   :  { %v276_v2 = vpop.permute.xlu1 %275 }
 0x239   :  { %v278_v3 = vmul.f32 %v276_v2, %v271_v0  ;;  %v279_v4 = vmul.f32 %v276_v2, %v272_v1 }
 0x23b   :  { %v280_v5 = vmax.f32 %v278_v3, 0.0  ;;  %v281_v6 = vmax.f32 %v279_v4, 0.0 }
 0x23d   :  { %282 = vst [vmem:[#allocation7] sm:$0xff] %v280_v5  ;;  %283 = vst [vmem:[#allocation7 + $0x8] sm:$0xff] %v281_v6 }
 0x23e   :  { %409 = shalt.err (!%p406_p6)
}
 0x23f   :  { %s410_s15 = scalar_lea.hbm %s515_s3, 256 }
 0x240   :  { %p411_p7 = scmp.ne.s32.totalorder %s515_s3, %s410_s15  ;;  %p414_p8 = scmp.lt.u32.totalorder %s410_s15, %s515_s3 }
 0x242   :  { %p416_p9 = pnand %p414_p8, %p411_p7 }
 0x244   :  { %419 = shalt.err (!%p416_p9)
}
 0x245   :  { %293 = dma.vmem_to_hbm [thread:$0]  %s291_s11, 256, %s515_s3, [#allocation4]  }
 0x246   :  { %424 = dma.done.wait [#allocation4], 256  }
 0x247   :  { %425 = vsyncadd [#allocation4], 4294967040 }
 0x248   :  { %297 = vsyncpa [#allocation3], 1 }
 0x249   :  { %298 = vsyncpa [#allocation6], 1 }
 0x24a   :  { %299 = vsyncpa [#allocation4], 1 }

</bundles_post_ra>
